<compile_context>
chip_gen: v7x
topology: tpu7x:2x2x1
jax: 0.10.0
libtpu: 0.0.40
codegen_flags: <defaults>
</compile_context>

<pallas_src>
import jax
import jax.numpy as jnp
from jax.experimental import pallas as pl
from jax.experimental.pallas import tpu as pltpu


def _round_up(n, m):
    return ((n + m - 1) // m) * m


def bnn_kernel(x_ref, w1_ref, b1_ref, w2_ref, b2_ref, o_ref):
    # fc1 on the MXU: bf16 operands, f32 accumulation.
    h = jnp.dot(x_ref[...], w1_ref[...], preferred_element_type=jnp.float32)
    h = h + b1_ref[...]                       # bias: loaded once, lane-broadcast
    # dropout(p=0.5) is identity in inference mode.
    # TODO(synk): training-mode dropout (random mask + 1/(1-p) scale) not implemented.
    h = jnp.maximum(h, 0.0)                   # ReLU
    # fc_end: output columns are pre-padded to a lane-dense 128-wide slab.
    y = jnp.dot(h.astype(w2_ref.dtype), w2_ref[...],
                preferred_element_type=jnp.float32)
    y = y + b2_ref[...]
    # sigmoid: exp -> EUP, approx reciprocal -> EUP (vrcp); epilogue stays off
    # the VALU critical path.
    o_ref[...] = pl.reciprocal(1.0 + jnp.exp(-y), approx=True)


def bnn_forward(x, w1, b1, w2, b2, *, tile_b=512):
    """x: [B, input_size] f32; w1: [input_size, 150]; b1: [1, 150];
    w2: [150, output_size]; b2: [1, output_size]  ->  [B, output_size] f32."""
    B, f_in = x.shape
    hidden = w1.shape[1]
    out_size = w2.shape[1]

    # Lane-dense output slab: pad output columns up to a multiple of 128.
    n_pad = _round_up(max(out_size, 128), 128)
    w2_p = jnp.zeros((hidden, n_pad), jnp.float32).at[:, :out_size].set(w2)
    b2_p = jnp.zeros((1, n_pad), jnp.float32).at[:, :out_size].set(b2)

    # Batch tile: multiple of 16 (bf16 sublane packing), capped by tile_b.
    tile_b = min(_round_up(tile_b, 16), _round_up(B, 16))
    b_pad = _round_up(B, tile_b)

    # bf16 for the MXU / HBM path; pad batch rows with zeros for the tail tile.
    x_b = x.astype(jnp.bfloat16)
    if b_pad > B:
        x_b = jnp.pad(x_b, ((0, b_pad - B), (0, 0)))
    w1_b = w1.astype(jnp.bfloat16)
    w2_b = w2_p.astype(jnp.bfloat16)
    b1_f = b1.astype(jnp.float32)

    grid = (b_pad // tile_b,)

    cost = pl.CostEstimate(
        flops=2 * b_pad * (f_in * hidden + hidden * n_pad),
        transcendentals=b_pad * n_pad,
        bytes_accessed=(b_pad * f_in * 2 + b_pad * n_pad * 4
                        + f_in * hidden * 2 + hidden * 4
                        + hidden * n_pad * 2 + n_pad * 4),
    )

    out_padded = pl.pallas_call(
        bnn_kernel,
        out_shape=jax.ShapeDtypeStruct((b_pad, n_pad), jnp.float32),
        grid=grid,
        in_specs=[
            pl.BlockSpec((tile_b, f_in), lambda i: (i, 0)),    # x: tiled rows
            pl.BlockSpec((f_in, hidden), lambda i: (0, 0)),    # w1: resident
            pl.BlockSpec((1, hidden), lambda i: (0, 0)),       # b1: resident
            pl.BlockSpec((hidden, n_pad), lambda i: (0, 0)),   # w2: resident
            pl.BlockSpec((1, n_pad), lambda i: (0, 0)),        # b2: resident
        ],
        out_specs=pl.BlockSpec((tile_b, n_pad), lambda i: (i, 0)),
        compiler_params=pltpu.CompilerParams(
            dimension_semantics=("parallel",)),                # megacore on v7x
        cost_estimate=cost,
    )(x_b, w1_b, b1_f, w2_b, b2_p)

    return out_padded[:B, :out_size]


def init_params(key, input_size, hidden_size, output_size):
    """Deterministic init mirroring PyTorch nn.Linear default
    (uniform in +/- 1/sqrt(fan_in)). Weights stored as [in, out]."""
    k1, k2, k3, k4 = jax.random.split(key, 4)
    bound1 = 1.0 / jnp.sqrt(jnp.float32(input_size))
    bound2 = 1.0 / jnp.sqrt(jnp.float32(hidden_size))
    w1 = jax.random.uniform(k1, (input_size, hidden_size), jnp.float32,
                            -bound1, bound1)
    b1 = jax.random.uniform(k2, (1, hidden_size), jnp.float32, -bound1, bound1)
    w2 = jax.random.uniform(k3, (hidden_size, output_size), jnp.float32,
                            -bound2, bound2)
    b2 = jax.random.uniform(k4, (1, output_size), jnp.float32, -bound2, bound2)
    return w1, b1, w2, b2


def ref_forward(x, w1, b1, w2, b2):
    """Plain-JAX reference on the same bf16 matmul path (f32 accumulation)."""
    xb = x.astype(jnp.bfloat16)
    w1b = w1.astype(jnp.bfloat16)
    w2b = w2.astype(jnp.bfloat16)
    h = jnp.dot(xb, w1b, preferred_element_type=jnp.float32) + b1
    h = jnp.maximum(h, 0.0)
    y = jnp.dot(h.astype(jnp.bfloat16), w2b,
                preferred_element_type=jnp.float32) + b2
    return jax.nn.sigmoid(y)


if __name__ == "__main__":
    key = jax.random.PRNGKey(0)
    kx, kp = jax.random.split(key)

    batch = 8
    input_size = 32
    hidden_size = 150   # fixed by the module definition
    output_size = 2

    x = jax.random.normal(kx, (batch, input_size), dtype=jnp.float32)
    w1, b1, w2, b2 = init_params(kp, input_size, hidden_size, output_size)

    # Small batch (single grid step, padded to 16 rows).
    logits = bnn_forward(x, w1, b1, w2, b2)
    jax.block_until_ready(logits)
    assert logits.shape == (batch, output_size)
    ref = ref_forward(x, w1, b1, w2, b2)
    assert jnp.allclose(logits, ref, atol=1e-2), "mismatch vs reference (small batch)"

    # Larger batch exercising the batch grid + tail padding path.
    big_batch = 1000
    x_big = jax.random.normal(kx, (big_batch, input_size), dtype=jnp.float32)
    logits_big = bnn_forward(x_big, w1, b1, w2, b2, tile_b=256)
    jax.block_until_ready(logits_big)
    assert logits_big.shape == (big_batch, output_size)
    ref_big = ref_forward(x_big, w1, b1, w2, b2)
    assert jnp.allclose(logits_big, ref_big, atol=1e-2), "mismatch vs reference (grid)"

    print("KERNEL_OK")
</pallas_src>

<mosaic_0001>
module attributes {stable_mosaic.version = 11 : i64} {
  func.func @bnn_kernel(%arg0: i32, %arg1: memref<16x32xbf16, #tpu.memory_space<vmem>>, %arg2: memref<32x150xbf16, #tpu.memory_space<vmem>>, %arg3: memref<1x150xf32, #tpu.memory_space<vmem>>, %arg4: memref<150x128xbf16, #tpu.memory_space<vmem>>, %arg5: memref<1x128xf32, #tpu.memory_space<vmem>>, %arg6: memref<16x128xf32, #tpu.memory_space<vmem>>) attributes {dimension_semantics = [#tpu.dimension_semantics<parallel>], iteration_bounds = array<i64: 1>, scalar_prefetch = 0 : i64, scratch_operands = 0 : i64, tpu.core_type = #tpu.core_type<tc>, window_params = [{transform_indices = @transform_0, window_bounds = array<i64: 16, 32>}, {pipeline_mode = #tpu.pipeline_mode<synchronous>, transform_indices = @transform_1, window_bounds = array<i64: 32, 150>}, {pipeline_mode = #tpu.pipeline_mode<synchronous>, transform_indices = @transform_2, window_bounds = array<i64: 1, 150>}, {pipeline_mode = #tpu.pipeline_mode<synchronous>, transform_indices = @transform_3, window_bounds = array<i64: 150, 128>}, {pipeline_mode = #tpu.pipeline_mode<synchronous>, transform_indices = @transform_4, window_bounds = array<i64: 1, 128>}, {transform_indices = @transform_5, window_bounds = array<i64: 16, 128>}]} {
    %c0 = arith.constant 0 : index
    %c0_0 = arith.constant 0 : index
    %0 = vector.load %arg1[%c0, %c0_0] : memref<16x32xbf16, #tpu.memory_space<vmem>>, vector<16x32xbf16>
    %c0_1 = arith.constant 0 : index
    %c0_2 = arith.constant 0 : index
    %1 = vector.load %arg2[%c0_1, %c0_2] : memref<32x150xbf16, #tpu.memory_space<vmem>>, vector<32x150xbf16>
    %cst = arith.constant dense<0.000000e+00> : vector<16x150xf32>
    %2 = tpu.matmul %0, %1, %cst {dimension_numbers = #tpu.dot_dimension_numbers<[1], [0], [0], [1], [0, 0, 1, 1], [], []>} : vector<16x32xbf16>, vector<32x150xbf16>, vector<16x150xf32> -> vector<16x150xf32>
    %c0_3 = arith.constant 0 : index
    %c0_4 = arith.constant 0 : index
    %3 = vector.load %arg3[%c0_3, %c0_4] : memref<1x150xf32, #tpu.memory_space<vmem>>, vector<1x150xf32>
    %4 = vector.broadcast %3 : vector<1x150xf32> to vector<16x150xf32>
    %5 = arith.addf %2, %4 : vector<16x150xf32>
    %cst_5 = arith.constant 0.000000e+00 : f32
    %6 = vector.broadcast %cst_5 : f32 to vector<16x150xf32>
    %7 = arith.maximumf %5, %6 : vector<16x150xf32>
    %8 = arith.truncf %7 : vector<16x150xf32> to vector<16x150xbf16>
    %c0_6 = arith.constant 0 : index
    %c0_7 = arith.constant 0 : index
    %9 = vector.load %arg4[%c0_6, %c0_7] : memref<150x128xbf16, #tpu.memory_space<vmem>>, vector<150x128xbf16>
    %cst_8 = arith.constant dense<0.000000e+00> : vector<16x128xf32>
    %10 = tpu.matmul %8, %9, %cst_8 {dimension_numbers = #tpu.dot_dimension_numbers<[1], [0], [0], [1], [0, 0, 1, 1], [], []>} : vector<16x150xbf16>, vector<150x128xbf16>, vector<16x128xf32> -> vector<16x128xf32>
    %c0_9 = arith.constant 0 : index
    %c0_10 = arith.constant 0 : index
    %11 = vector.load %arg5[%c0_9, %c0_10] : memref<1x128xf32, #tpu.memory_space<vmem>>, vector<1x128xf32>
    %12 = vector.broadcast %11 : vector<1x128xf32> to vector<16x128xf32>
    %13 = arith.addf %10, %12 : vector<16x128xf32>
    %cst_11 = arith.constant 0.000000e+00 : f32
    %14 = vector.broadcast %cst_11 : f32 to vector<16x128xf32>
    %15 = arith.subf %14, %13 : vector<16x128xf32>
    %16 = math.exp %15 : vector<16x128xf32>
    %cst_12 = arith.constant 1.000000e+00 : f32
    %17 = vector.broadcast %cst_12 : f32 to vector<16x128xf32>
    %18 = arith.addf %17, %16 : vector<16x128xf32>
    %19 = tpu.reciprocal %18 {approx = true} : vector<16x128xf32> -> vector<16x128xf32>
    %c0_13 = arith.constant 0 : index
    %c0_14 = arith.constant 0 : index
    %20 = vector.load %arg6[%c0_13, %c0_14] : memref<16x128xf32, #tpu.memory_space<vmem>>, vector<16x128xf32>
    tpu.vector_store %arg6[%c0_13, %c0_14], %19 {strides = array<i32>} : memref<16x128xf32, #tpu.memory_space<vmem>>, vector<16x128xf32>,
    return
  }
  func.func @transform_0(%arg0: i32) -> (i32, i32) {
    %c0_i32 = arith.constant 0 : i32
    %c0_i32_0 = arith.constant 0 : i32
    return %arg0, %c0_i32 : i32, i32
  }
  func.func @transform_1(%arg0: i32) -> (i32, i32) {
    %c0_i32 = arith.constant 0 : i32
    %c0_i32_0 = arith.constant 0 : i32
    %c0_i32_1 = arith.constant 0 : i32
    return %c0_i32, %c0_i32_0 : i32, i32
  }
  func.func @transform_2(%arg0: i32) -> (i32, i32) {
    %c0_i32 = arith.constant 0 : i32
    %c0_i32_0 = arith.constant 0 : i32
    %c0_i32_1 = arith.constant 0 : i32
    return %c0_i32, %c0_i32_0 : i32, i32
  }
  func.func @transform_3(%arg0: i32) -> (i32, i32) {
    %c0_i32 = arith.constant 0 : i32
    %c0_i32_0 = arith.constant 0 : i32
    %c0_i32_1 = arith.constant 0 : i32
    return %c0_i32, %c0_i32_0 : i32, i32
  }
  func.func @transform_4(%arg0: i32) -> (i32, i32) {
    %c0_i32 = arith.constant 0 : i32
    %c0_i32_0 = arith.constant 0 : i32
    %c0_i32_1 = arith.constant 0 : i32
    return %c0_i32, %c0_i32_0 : i32, i32
  }
  func.func @transform_5(%arg0: i32) -> (i32, i32) {
    %c0_i32 = arith.constant 0 : i32
    %c0_i32_0 = arith.constant 0 : i32
    return %arg0, %c0_i32 : i32, i32
  }
}

</mosaic_0001>

<bundles_post_ra>
// kernel: tpu_custom_call.1
= control target key start
LH: loop header
LB: loop body
LE: loop exit
PB: predicated region body
PF: predicated region fallthrough
CT: control target
= control target key end

     0   :  { %10 = vsyncpa [#allocation3], 0  ;;  %s566_s0 = inlined_call_operand.hbm [shape: bf16[16,32], index: 0, kind: input, shape index: {}]   ;;  %s567_s1 = inlined_call_operand.hbm [shape: bf16[32,150], index: 1, kind: input, shape index: {}]   ;;  %s568_s2 = inlined_call_operand.vmem [shape: f32[1,150], index: 2, kind: input, shape index: {}]   ;;  %s569_s3 = inlined_call_operand.hbm [shape: bf16[150,128], index: 3, kind: input, shape index: {}]   ;;  %s570_s4 = inlined_call_operand.vmem [shape: f32[1,128], index: 4, kind: input, shape index: {}]   ;;  %s571_s5 = inlined_call_operand.hbm [shape: f32[16,128], index: 5, kind: output, shape index: {}]  }
   0x1   :  { %11 = vsyncpa [#allocation6], 0 }
   0x2   :  { %12 = vsyncpa [#allocation4], 0  ;;  %s467_s18 = smov [#allocation5]   ;;  %s373_s22 = scalar_lea.hbm %s567_s1, 512 }
   0x3   :  { %s30_s19 = sshll.u32 %s467_s18, 4  ;;  %p374_p0 = scmp.ne.s32.totalorder %s567_s1, %s373_s22  ;;  %s31_s19 = int_to_ptr.vmem [resolvable:$true] %s30_s19 }
   0x4   :  { %p377_p1 = scmp.lt.u32.totalorder %s373_s22, %s567_s1 }
   0x6   :  { %p379_p2 = pnand %p377_p1, %p374_p0 }
   0x8   :  { %382 = shalt.err (!%p379_p2)
}
   0x9   :  { %s383_s27 = scalar_lea.vmem %s31_s19, 512  ;;  %p388_p4 = scmp.lt.s32.totalorder %s31_s19, %s31_s19 }
   0xa   :  { %p384_p3 = scmp.ne.s32.totalorder %s31_s19, %s383_s27  ;;  %p389_p5 = scmp.lt.s32.totalorder %s383_s27, %s383_s27 }
   0xc   :  { %p390_p6 = por %p389_p5, %p388_p4 }
   0xe   :  { %p391_p7 = pnand %p390_p6, %p384_p3 }
  0x10   :  { %394 = shalt.err (!%p391_p7)
}
  0x11   :  { %s468_s28 = smov 128   ;;  %s469_s29 = smov 8  }
  0x12   :  { %36 = dma.hbm_to_vmem [thread:$0]  %s567_s1, 512, %s31_s19, [#allocation6], %s468_s28, %s468_s28, %s469_s29  }
  0x13   :  { %s470_s7 = smov [#allocation2]   ;;  %s395_s11 = scalar_lea.hbm %s566_s0, 128 }
  0x14   :  { %s18_s8 = sshll.u32 %s470_s7, 4  ;;  %p396_p8 = scmp.ne.s32.totalorder %s566_s0, %s395_s11  ;;  %s19_s8 = int_to_ptr.vmem [resolvable:$true] %s18_s8 }
  0x15   :  { %p399_p9 = scmp.lt.u32.totalorder %s395_s11, %s566_s0 }
  0x17   :  { %p401_p10 = pnand %p399_p9, %p396_p8 }
  0x19   :  { %404 = shalt.err (!%p401_p10)
}
  0x1a   :  { %s405_s16 = scalar_lea.vmem %s19_s8, 128  ;;  %p410_p12 = scmp.lt.s32.totalorder %s19_s8, %s19_s8 }
  0x1b   :  { %p406_p11 = scmp.ne.s32.totalorder %s19_s8, %s405_s16  ;;  %p411_p13 = scmp.lt.s32.totalorder %s405_s16, %s405_s16 }
  0x1d   :  { %p412_p0 = por %p411_p13, %p410_p12 }
  0x1f   :  { %p413_p1 = pnand %p412_p0, %p406_p11 }
  0x21   :  { %416 = shalt.err (!%p413_p1)
}
  0x22   :  { %s471_s1 = smov 64   ;;  %s472_s17 = smov 4  }
  0x23   :  { %24 = dma.hbm_to_vmem [thread:$0]  %s566_s0, 128, %s19_s8, [#allocation3], %s471_s1, %s471_s1, %s472_s17  }
  0x24   :  { %s473_s20 = smov [#allocation7]   ;;  %s417_s24 = scalar_lea.hbm %s569_s3, 1216 }
  0x25   :  { %s44_s21 = sshll.u32 %s473_s20, 4  ;;  %p418_p2 = scmp.ne.s32.totalorder %s569_s3, %s417_s24  ;;  %s45_s21 = int_to_ptr.vmem [resolvable:$true] %s44_s21 }
  0x26   :  { %p421_p3 = scmp.lt.u32.totalorder %s417_s24, %s569_s3 }
  0x28   :  { %p423_p4 = pnand %p421_p3, %p418_p2 }
  0x2a   :  { %426 = shalt.err (!%p423_p4)
}
  0x2b   :  { %s427_s6 = scalar_lea.vmem %s45_s21, 1216  ;;  %p432_p6 = scmp.lt.s32.totalorder %s45_s21, %s45_s21 }
  0x2c   :  { %p428_p5 = scmp.ne.s32.totalorder %s45_s21, %s427_s6  ;;  %p433_p7 = scmp.lt.s32.totalorder %s427_s6, %s427_s6 }
  0x2e   :  { %p434_p8 = por %p433_p7, %p432_p6 }
  0x30   :  { %p435_p9 = pnand %p434_p8, %p428_p5 }
  0x32   :  { %438 = shalt.err (!%p435_p9)
}
  0x33   :  { %50 = dma.hbm_to_vmem [thread:$0]  %s569_s3, 1216, %s45_s21, [#allocation6], %s471_s1, %s471_s1, %s472_s17  }
  0x34   :  { %461 = dma.done.wait [#allocation3], 128  }
  0x35   :  { %462 = vsyncadd [#allocation3], 4294967168 }
  0x36   :  { %463 = dma.done.wait [#allocation6], 1728  }
  0x37   :  { %464 = vsyncadd [#allocation6], 4294965568  ;;  %v474_v0 = vmov 0   ;;  %v348_v1 = vld [vmem:[#allocation5 + $0x4] ss:$8 sps:$4 sm:$0xff]   ;;  %v354_v6 = vld [vmem:[#allocation2] sm:$0xff]   ;;  %v71_v17 = vlaneseq }
  0x38   :  { %142 = vmatprep.mubr.bf16.mxu0 %v474_v0  ;;  %250 = vmatprep.subr.bf16.mxu1 %v474_v0  ;;  %v350_v2 = vld [vmem:[#allocation5] ss:$8 sps:$4 sm:$0xff]   ;;  %v351_v3 = vld [vmem:[#allocation5 + $0x14] ss:$8 sps:$4 sm:$0xff]   ;;  %v353_v4 = vld [vmem:[#allocation5 + $0x10] ss:$8 sps:$4 sm:$0xff]  }
  0x39   :  { %110 = vmatprep.subr.bf16.mxu0 %v348_v1  ;;  %v355_v5 = vld [vmem:[#allocation7] sm:$0xff]   ;;  %v356_v7 = vld [vmem:[#allocation7 + $0x8] sm:$0xff]   ;;  %vm106_vm0 = vcmask 261120   ;;  %v357_v8 = vld [vmem:[#allocation7 + $0x10] sm:$0xff]   ;;  %vm246_vm1 = vcmask 1042432   ;;  %v72_v18 = vshrl.u32 %v71_v17, 7 }
  0x3a   :  { %111 = vmatpush1.bf16.msra.mxu0 %v350_v2  ;;  %251 = vmatpush1.bf16.msra.mxu1 %v355_v5  ;;  %v358_v9 = vld [vmem:[#allocation7 + $0x18] sm:$0xff]   ;;  %v359_v10 = vld [vmem:[#allocation7 + $0x20] sm:$0xff]   ;;  %v360_v11 = vld [vmem:[#allocation7 + $0x28] sm:$0xff]   ;;  %vm242_vm2 = vcmask 179200   ;;  %s475_s10 = smov [#allocation8]  }
  0x3b   :  { %112 = vmatprep.subr.bf16.mxu0 %v351_v3  ;;  %252 = vmatprep.subr.bf16.mxu1 %v474_v0  ;;  %v361_v12 = vld [vmem:[#allocation7 + $0x30] sm:$0xff]   ;;  %v362_v13 = vld [vmem:[#allocation7 + $0x38] sm:$0xff]   ;;  %v363_v14 = vld [vmem:[#allocation7 + $0x40] sm:$0xff]   ;;  %v73_v19 = vsub.s32 0, %v72_v18  ;;  %v77_v21 = vsub.s32 1, %v72_v18 }
  0x3c   :  { %v364_v15 = vld [vmem:[#allocation7 + $0x48] ss:$0 sps:$4 sm:$0x77]   ;;  %v69_v20 = vld [vmem:[%s568_s2] sm:$0x3] }
  0x3d   :  { %v248_v16 = vsel %vm246_vm1, %v364_v15, 0  ;;  %v74_v22 = vrot.slane %v69_v20, %v73_v19  ;;  %v78_v23 = vrot.slane %v69_v20, %v77_v21  ;;  %v327_v38 = vld [vmem:[%s570_s4] ss:$0 sm:$0xff]  ;;  %s308_s4 = sshll.u32 %s475_s10, 4  ;;  %s309_s4 = int_to_ptr.vmem [resolvable:$true] %s308_s4 }
  0x3e   :  { %113 = vmatpush1.bf16.msra.mxu0 %v353_v4  ;;  %253 = vmatpush1.bf16.msra.mxu1 %v356_v7  ;;  %s439_s11 = scalar_lea.vmem %s309_s4, 256  ;;  %p444_p11 = scmp.lt.s32.totalorder %s309_s4, %s309_s4 }
  0x3f   :  { %254 = vmatprep.subr.bf16.mxu1 %v474_v0  ;;  %p440_p10 = scmp.ne.s32.totalorder %s309_s4, %s439_s11  ;;  %p445_p12 = scmp.lt.s32.totalorder %s439_s11, %s439_s11 }
  0x41   :  { %326 = vmatmul.mubr.msk.bf16.vlgmr.msra.gmra.mrb[0].mxu0 %vm106_vm0, %v354_v6  ;;  %p446_p13 = por %p445_p12, %p444_p11 }
  0x42   :  { %255 = vmatpush1.bf16.msra.mxu1 %v357_v8 }
  0x43   :  { %256 = vmatprep.subr.bf16.mxu1 %v474_v0  ;;  %p447_p0 = pnand %p446_p13, %p440_p10 }
  0x46   :  { %257 = vmatpush1.bf16.msra.mxu1 %v358_v9 }
  0x47   :  { %258 = vmatprep.subr.bf16.mxu1 %v474_v0 }
  0x4a   :  { %259 = vmatpush1.bf16.msra.mxu1 %v359_v10 }
  0x4b   :  { %260 = vmatprep.subr.bf16.mxu1 %v474_v0 }
  0x4e   :  { %261 = vmatpush1.bf16.msra.mxu1 %v360_v11 }
  0x4f   :  { %262 = vmatprep.subr.bf16.mxu1 %v474_v0 }
  0x52   :  { %263 = vmatpush1.bf16.msra.mxu1 %v361_v12 }
  0x53   :  { %264 = vmatprep.subr.bf16.mxu1 %v474_v0 }
  0x56   :  { %265 = vmatpush1.bf16.msra.mxu1 %v362_v13 }
  0x57   :  { %266 = vmatprep.subr.bf16.mxu1 %v474_v0 }
  0x5a   :  { %267 = vmatpush1.bf16.msra.mxu1 %v363_v14 }
  0x5b   :  { %268 = vmatprep.subr.bf16.mxu1 %v474_v0 }
  0x5e   :  { %269 = vmatpush1.bf16.msra.mxu1 %v248_v16 }
 0x114   :  { %v144_v24 = vpop.f32.mrb[0].mxu0 }
 0x115   :  { %v145_v25 = vadd.f32 %v144_v24, %v74_v22  ;;  %v146_v26 = vpop.f32.mrb[1].mxu0 }
 0x116   :  { %v147_v27 = vadd.f32 %v146_v26, %v78_v23  ;;  %v148_v28 = vpop.f32.mrb[2].mxu0 }
 0x117   :  { %v149_v29 = vadd.f32 %v148_v28, %v74_v22  ;;  %v150_v30 = vpop.f32.mrb[3].mxu0  ;;  %v153_v32 = vmax.f32 %v145_v25, 0.0 }
 0x118   :  { %v151_v31 = vadd.f32 %v150_v30, %v78_v23  ;;  %v154_v34 = vmax.f32 %v147_v27, 0.0 }
 0x119   :  { %v155_v33 = vmax.f32 %v149_v29, 0.0 }
 0x11a   :  { %v156_v35 = vmax.f32 %v151_v31, 0.0 }
 0x11b   :  { %v157_v36 = vpack.c.bf16 %v155_v33, %v153_v32 }
 0x11c   :  { %v158_v37 = vpack.c.bf16 %v156_v35, %v154_v34 }
 0x11e   :  { %338 = vmatprep.mubr.msk.bf16.mxu1 %vm242_vm2, %v158_v37 }
 0x11f   :  { %283 = vmatmul.mubr.bf16.vlgmr.msra.gmra.mrb[0].mxu1 %v157_v36 }
 0x1f2   :  { %v284_v39 = vpop.f32.mrb[0].mxu1 }
 0x1f3   :  { %v285_v40 = vadd.f32 %v327_v38, %v284_v39  ;;  %v286_v41 = vpop.f32.mrb[1].mxu1 }
 0x1f4   :  { %v287_v42 = vpop.f32.mrb[2].mxu1 }
 0x1f5   :  { %v291_v43 = vsub.f32 0.0, %v285_v40  ;;  %v288_v44 = vadd.f32 %v327_v38, %v287_v42  ;;  %v289_v45 = vpop.f32.mrb[3].mxu1 }
 0x1f7   :  { %v293_v46 = vmul.f32 1.442695, %v291_v43  ;;  %v292_v47 = vsub.f32 0.0, %v288_v44 }
 0x1f9   :  { %365 = vpow2.f32 %v293_v46  ;;  %v295_v48 = vmul.f32 1.442695, %v292_v47 }
 0x1fb   :  { %367 = vpow2.f32 %v295_v48 }
 0x203   :  { %v366_v49 = vpop.eup %365 }
 0x204   :  { %v297_v50 = vadd.f32 1.0, %v366_v49 }
 0x205   :  { %v368_v51 = vpop.eup %367 }
 0x206   :  { %369 = vrcp.f32 %v297_v50  ;;  %v298_v52 = vadd.f32 1.0, %v368_v51 }
 0x208   :  { %371 = vrcp.f32 %v298_v52 }
 0x210   :  { %v370_v53 = vpop.eup %369 }
 0x211   :  { %301 = vst [vmem:[#allocation8] sm:$0xff] %v370_v53 }
 0x212   :  { %v372_v54 = vpop.eup %371 }
 0x213   :  { %302 = vst [vmem:[#allocation8 + $0x8] sm:$0xff] %v372_v54 }
 0x214   :  { %450 = shalt.err (!%p447_p0)
}
 0x215   :  { %s451_s14 = scalar_lea.hbm %s571_s5, 256 }
 0x216   :  { %p452_p1 = scmp.ne.s32.totalorder %s571_s5, %s451_s14  ;;  %p455_p2 = scmp.lt.u32.totalorder %s451_s14, %s571_s5 }
 0x218   :  { %p457_p3 = pnand %p455_p2, %p452_p1 }
 0x21a   :  { %460 = shalt.err (!%p457_p3)
}
 0x21b   :  { %314 = dma.vmem_to_hbm [thread:$0]  %s309_s4, 256, %s571_s5, [#allocation4], %s468_s28, %s468_s28, %s469_s29  }
 0x21c   :  { %465 = dma.done.wait [#allocation4], 256  }
 0x21d   :  { %466 = vsyncadd [#allocation4], 4294967040 }
 0x21e   :  { %318 = vsyncpa [#allocation3], 1 }
 0x21f   :  { %319 = vsyncpa [#allocation6], 1 }
 0x220   :  { %320 = vsyncpa [#allocation4], 1 }

</bundles_post_ra>
